<compile_context>
chip_gen: v5e
topology: v5e:2x2
jax: 0.10.0
libtpu: 0.0.40
codegen_flags: <defaults>
</compile_context>

<pallas_src>
import jax
import jax.numpy as jnp
from jax.experimental import pallas as pl
from jax.experimental.pallas import tpu as pltpu

SEQ_LEN = 1            # matches `seq_len = 1` in the reference module
LN_EPS = 1e-5          # torch.nn.LayerNorm default eps

_LANE = 128
_SUBLANE_BF16 = 16     # bf16 packs 16 sublanes per vreg
_TM_MAX = 512          # max row tile
_TK_MAX = 8192         # max K tile for the K-tiled fallback


def _round_up(x, m):
    return (x + m - 1) // m * m


def _cdiv(a, b):
    return -(-a // b)


def _vmem_capacity_bytes():
    """Physical VMEM of the attached chip; conservative 64 MiB (v7x) fallback."""
    try:
        cap = getattr(pltpu.get_tpu_info(), "vmem_capacity_bytes", None)
        if cap:
            return int(cap)
    except Exception:
        pass
    return 64 << 20


def _ln_silu_epilogue(h, g, b):
    """f32 LayerNorm(E) affine + SiLU."""
    mean = jnp.mean(h, axis=-1, keepdims=True)
    centered = h - mean
    var = jnp.mean(centered * centered, axis=-1, keepdims=True)
    normed = centered * jax.lax.rsqrt(var + LN_EPS)
    normed = normed * g + b
    return normed * jax.nn.sigmoid(normed)   # SiLU


def _encoder_resident_kernel(x_ref, w_ref, g_ref, b_ref, o_ref):
    """Grid (Mtiles,). W block index never changes -> stays VMEM-resident for the whole call."""
    h = jnp.dot(x_ref[...].astype(w_ref.dtype), w_ref[...],
                preferred_element_type=jnp.float32)
    act = _ln_silu_epilogue(h, g_ref[...], b_ref[...])
    # Dropout(0.5) in eval mode == identity.
    o_ref[...] = act.astype(o_ref.dtype)


def _encoder_ktiled_kernel(x_ref, w_ref, g_ref, b_ref, o_ref, acc_ref):
    """Grid (Mtiles, Ktiles): accumulate (tm,tk)@(tk,E) in f32; LN+SiLU on the last K step."""
    k = pl.program_id(1)

    @pl.when(k == 0)
    def _():
        acc_ref[...] = jnp.zeros_like(acc_ref)

    acc_ref[...] += jnp.dot(x_ref[...].astype(w_ref.dtype), w_ref[...],
                            preferred_element_type=jnp.float32)

    @pl.when(k == pl.num_programs(1) - 1)
    def _():
        act = _ln_silu_epilogue(acc_ref[...], g_ref[...], b_ref[...])
        o_ref[...] = act.astype(o_ref.dtype)


def init_params(key, voxel_sizes, shared_embed_size):
    """Deterministic synthetic f32 parameters (Linear weight, LayerNorm gamma/beta)."""
    params = []
    for i, v in enumerate(voxel_sizes):
        wkey = jax.random.fold_in(key, i)
        # PyTorch Linear weight is [E, V]; we store its transpose [V, E].
        scale = 1.0 / jnp.sqrt(jnp.float32(v))
        W = jax.random.uniform(wkey, (v, shared_embed_size),
                               minval=-scale, maxval=scale, dtype=jnp.float32)
        gamma = jnp.ones((1, shared_embed_size), jnp.float32)
        beta = jnp.zeros((1, shared_embed_size), jnp.float32)
        params.append((W, gamma, beta))
    return params


def prepare_params(params, *, vmem_budget_bytes=None, max_tk=_TK_MAX):
    """One-time per-subject weight prep: bf16 cast + K zero-pad + tiling/residency decision.

    Keeping this out of `voxel_encoder_forward` means the forward path never re-reads /
    re-writes the f32 weight from HBM.
    """
    if vmem_budget_bytes is None:
        vmem_budget_bytes = int(_vmem_capacity_bytes() * 0.55)

    prepared = []
    for (W, gamma, beta) in params:
        V, E = W.shape
        Vp = _round_up(V, _LANE)                       # <128 cols of zero-pad waste

        # --- W-resident layout: W (worst-case double-buffered) + f32 x/out row tiles. ---
        w_resident_bytes = 2 * Vp * E * 2 + 4 * E * 4
        per_row_bytes = 2 * (Vp * 4 + E * 4)           # x + out, f32, double-buffered
        avail = vmem_budget_bytes - w_resident_bytes
        tm_fit = (avail // per_row_bytes) // _SUBLANE_BF16 * _SUBLANE_BF16 if avail > 0 else 0

        if tm_fit >= _SUBLANE_BF16:
            tk = None                                  # W-resident, no K tiling
            tm_cap = min(_TM_MAX, int(tm_fit))
        else:
            # --- K-tiled fallback for very large voxel counts. ---
            n_k = _cdiv(Vp, max_tk)
            tk = _round_up(_cdiv(Vp, n_k), _LANE)      # 128-aligned, divides padded V
            Vp = tk * n_k
            per_row = 2 * tk * 4 + 2 * E * 4 + E * 4   # x (dbl), out (dbl), f32 acc
            avail = vmem_budget_bytes - (2 * tk * E * 2 + 4 * E * 4)
            tm_cap = max(_SUBLANE_BF16,
                         min(_TM_MAX, (avail // per_row) // _SUBLANE_BF16 * _SUBLANE_BF16))

        Wp = jnp.pad(W, ((0, Vp - V), (0, 0))).astype(jnp.bfloat16)
        prepared.append(dict(W=Wp, gamma=gamma, beta=beta, V=V, tk=tk, tm_cap=int(tm_cap)))
    return prepared


def voxel_encoder_forward(x, prepared_params, subj_idx):
    """Reproduces VoxelEncoder.forward (eval mode).

    x: [B, seq_len, voxel_sizes[subj_idx]]  (float32)
    prepared_params: output of prepare_params()
    subj_idx: Python int (module-list indexing is static)
    returns: [B, seq_len, shared_embed_size]  (float32)
    """
    p = prepared_params[subj_idx]
    Wp, gamma, beta = p["W"], p["gamma"], p["beta"]
    V, tk, tm_cap = p["V"], p["tk"], p["tm_cap"]
    Vp, E = Wp.shape
    B, S, Vx = x.shape
    assert Vx == V, (Vx, V)

    # Fold seq into batch -> one kernel launch, bigger MXU M dimension.
    M = B * S
    x2 = x.reshape(M, V)                               # stays f32; cast to bf16 in-kernel
    if Vp != V:
        x2 = jnp.pad(x2, ((0, 0), (0, Vp - V)))        # exact: Linear has no bias

    tm = min(_round_up(M, _SUBLANE_BF16), tm_cap)
    Mp = _round_up(M, tm)
    if Mp != M:
        x2 = jnp.pad(x2, ((0, Mp - M), (0, 0)))

    m_tiles = Mp // tm
    # Only shard rows across TensorCores when there is more than one row tile; otherwise the
    # second core would just duplicate the dominant W HBM stream.
    m_sem = "parallel" if m_tiles > 1 else "arbitrary"
    vmem_limit = min(int(_vmem_capacity_bytes() * 0.7), 128 << 20)

    if tk is None:
        # --- W-resident single-pass layout: W read from HBM exactly once per call. ---
        out2 = pl.pallas_call(
            _encoder_resident_kernel,
            out_shape=jax.ShapeDtypeStruct((Mp, E), jnp.float32),
            grid=(m_tiles,),
            in_specs=[
                pl.BlockSpec((tm, Vp), lambda i: (i, 0)),    # x row tile (f32)
                pl.BlockSpec((Vp, E), lambda i: (0, 0)),     # W: index never changes -> resident
                pl.BlockSpec((1, E), lambda i: (0, 0)),      # gamma
                pl.BlockSpec((1, E), lambda i: (0, 0)),      # beta
            ],
            out_specs=pl.BlockSpec((tm, E), lambda i: (i, 0)),
            compiler_params=pltpu.CompilerParams(
                dimension_semantics=(m_sem,),
                vmem_limit_bytes=vmem_limit),
        )(x2, Wp, gamma, beta)
    else:
        # --- K-tiled fallback (very large voxel counts): f32 accumulator, fused epilogue. ---
        out2 = pl.pallas_call(
            _encoder_ktiled_kernel,
            out_shape=jax.ShapeDtypeStruct((Mp, E), jnp.float32),
            grid=(m_tiles, Vp // tk),
            in_specs=[
                pl.BlockSpec((tm, tk), lambda i, k: (i, k)),
                pl.BlockSpec((tk, E), lambda i, k: (k, 0)),
                pl.BlockSpec((1, E), lambda i, k: (0, 0)),
                pl.BlockSpec((1, E), lambda i, k: (0, 0)),
            ],
            out_specs=pl.BlockSpec((tm, E), lambda i, k: (i, 0)),
            scratch_shapes=[pltpu.VMEM((tm, E), jnp.float32)],
            compiler_params=pltpu.CompilerParams(
                dimension_semantics=(m_sem, "arbitrary"),
                vmem_limit_bytes=vmem_limit),
        )(x2, Wp, gamma, beta)

    return out2[:M].reshape(B, S, E)


def reference_forward(x, params, subj_idx):
    """Pure-JAX reference (same bf16 matmul / f32 epilogue numerics as the kernel)."""
    W, gamma, beta = params[subj_idx]
    h = jnp.einsum("bsv,ve->bse",
                   x.astype(jnp.bfloat16), W.astype(jnp.bfloat16),
                   preferred_element_type=jnp.float32)
    mean = jnp.mean(h, axis=-1, keepdims=True)
    var = jnp.mean((h - mean) ** 2, axis=-1, keepdims=True)
    n = (h - mean) * jax.lax.rsqrt(var + LN_EPS)
    n = n * gamma[0][None, None, :] + beta[0][None, None, :]
    return n * jax.nn.sigmoid(n)


if __name__ == "__main__":
    key = jax.random.PRNGKey(0)

    voxel_sizes = [64, 96]        # two "subjects" with different voxel counts
    shared_embed_size = 128
    batch = 4

    params = init_params(jax.random.fold_in(key, 1000), voxel_sizes, shared_embed_size)
    # One-time weight prep (bf16 cast + 128-lane pad + residency decision).
    enc_params = prepare_params(params)

    # --- W-resident fast path (the common case) ---
    for subj_idx, v in enumerate(voxel_sizes):
        xkey = jax.random.fold_in(key, 7 + subj_idx)
        x = jax.random.normal(xkey, (batch, SEQ_LEN, v), dtype=jnp.float32)

        out = jax.block_until_ready(voxel_encoder_forward(x, enc_params, subj_idx))
        ref = reference_forward(x, params, subj_idx)

        assert out.shape == (batch, SEQ_LEN, shared_embed_size), out.shape
        max_err = float(jnp.max(jnp.abs(out - ref)))
        assert jnp.allclose(out, ref, atol=1e-3, rtol=1e-3), max_err

    # --- K-tiled fallback path, forced via a tiny budget / small tk (multi-step K accumulation) ---
    tiled_sizes = [640]
    tiled_params = init_params(jax.random.fold_in(key, 2000), tiled_sizes, shared_embed_size)
    tiled_prepared = prepare_params(tiled_params, vmem_budget_bytes=64 * 1024, max_tk=128)
    assert tiled_prepared[0]["tk"] == 128  # 5 K-steps over Vp=640

    xk = jax.random.normal(jax.random.fold_in(key, 99), (batch, SEQ_LEN, tiled_sizes[0]),
                           dtype=jnp.float32)
    out = jax.block_until_ready(voxel_encoder_forward(xk, tiled_prepared, 0))
    ref = reference_forward(xk, tiled_params, 0)
    max_err = float(jnp.max(jnp.abs(out - ref)))
    assert jnp.allclose(out, ref, atol=1e-3, rtol=1e-3), max_err

    print("KERNEL_OK")
</pallas_src>

<mosaic_0001>
module attributes {stable_mosaic.version = 11 : i64} {
  func.func @_encoder_resident_kernel(%arg0: i32, %arg1: memref<16x128xf32, #tpu.memory_space<vmem>>, %arg2: memref<128x128xbf16, #tpu.memory_space<vmem>>, %arg3: memref<1x128xf32, #tpu.memory_space<vmem>>, %arg4: memref<1x128xf32, #tpu.memory_space<vmem>>, %arg5: memref<16x128xf32, #tpu.memory_space<vmem>>) attributes {dimension_semantics = [#tpu.dimension_semantics<arbitrary>], iteration_bounds = array<i64: 1>, scalar_prefetch = 0 : i64, scratch_operands = 0 : i64, tpu.core_type = #tpu.core_type<tc>, window_params = [{transform_indices = @transform_0, window_bounds = array<i64: 16, 128>}, {pipeline_mode = #tpu.pipeline_mode<synchronous>, transform_indices = @transform_1, window_bounds = array<i64: 128, 128>}, {pipeline_mode = #tpu.pipeline_mode<synchronous>, transform_indices = @transform_2, window_bounds = array<i64: 1, 128>}, {pipeline_mode = #tpu.pipeline_mode<synchronous>, transform_indices = @transform_3, window_bounds = array<i64: 1, 128>}, {transform_indices = @transform_4, window_bounds = array<i64: 16, 128>}]} {
    %c0 = arith.constant 0 : index
    %c0_0 = arith.constant 0 : index
    %0 = vector.load %arg1[%c0, %c0_0] : memref<16x128xf32, #tpu.memory_space<vmem>>, vector<16x128xf32>
    %1 = arith.truncf %0 : vector<16x128xf32> to vector<16x128xbf16>
    %c0_1 = arith.constant 0 : index
    %c0_2 = arith.constant 0 : index
    %2 = vector.load %arg2[%c0_1, %c0_2] : memref<128x128xbf16, #tpu.memory_space<vmem>>, vector<128x128xbf16>
    %cst = arith.constant dense<0.000000e+00> : vector<16x128xf32>
    %3 = tpu.matmul %1, %2, %cst {dimension_numbers = #tpu.dot_dimension_numbers<[1], [0], [0], [1], [0, 0, 1, 1], [], []>} : vector<16x128xbf16>, vector<128x128xbf16>, vector<16x128xf32> -> vector<16x128xf32>
    %c0_3 = arith.constant 0 : index
    %c0_4 = arith.constant 0 : index
    %4 = vector.load %arg3[%c0_3, %c0_4] : memref<1x128xf32, #tpu.memory_space<vmem>>, vector<1x128xf32>
    %c0_5 = arith.constant 0 : index
    %c0_6 = arith.constant 0 : index
    %5 = vector.load %arg4[%c0_5, %c0_6] : memref<1x128xf32, #tpu.memory_space<vmem>>, vector<1x128xf32>
    %cst_7 = arith.constant dense<0.000000e+00> : vector<16xf32>
    %6 = vector.multi_reduction <add>, %3, %cst_7 [1] : vector<16x128xf32> to vector<16xf32>
    %7 = vector.shape_cast %6 : vector<16xf32> to vector<16x1xf32>
    %cst_8 = arith.constant 1.280000e+02 : f32
    %8 = vector.broadcast %cst_8 : f32 to vector<16x1xf32>
    %9 = arith.divf %7, %8 : vector<16x1xf32>
    %10 = vector.broadcast %9 : vector<16x1xf32> to vector<16x128xf32>
    %11 = arith.subf %3, %10 : vector<16x128xf32>
    %12 = arith.mulf %11, %11 : vector<16x128xf32>
    %cst_9 = arith.constant dense<0.000000e+00> : vector<16xf32>
    %13 = vector.multi_reduction <add>, %12, %cst_9 [1] : vector<16x128xf32> to vector<16xf32>
    %14 = vector.shape_cast %13 : vector<16xf32> to vector<16x1xf32>
    %cst_10 = arith.constant 1.280000e+02 : f32
    %15 = vector.broadcast %cst_10 : f32 to vector<16x1xf32>
    %16 = arith.divf %14, %15 : vector<16x1xf32>
    %cst_11 = arith.constant 9.99999974E-6 : f32
    %17 = vector.broadcast %cst_11 : f32 to vector<16x1xf32>
    %18 = arith.addf %16, %17 : vector<16x1xf32>
    %19 = math.rsqrt %18 : vector<16x1xf32>
    %20 = vector.broadcast %19 : vector<16x1xf32> to vector<16x128xf32>
    %21 = arith.mulf %11, %20 : vector<16x128xf32>
    %22 = vector.broadcast %4 : vector<1x128xf32> to vector<16x128xf32>
    %23 = arith.mulf %21, %22 : vector<16x128xf32>
    %24 = vector.broadcast %5 : vector<1x128xf32> to vector<16x128xf32>
    %25 = arith.addf %23, %24 : vector<16x128xf32>
    %26 = arith.negf %25 : vector<16x128xf32>
    %27 = math.exp %26 : vector<16x128xf32>
    %cst_12 = arith.constant 1.000000e+00 : f32
    %28 = vector.broadcast %cst_12 : f32 to vector<16x128xf32>
    %29 = arith.addf %28, %27 : vector<16x128xf32>
    %30 = arith.divf %28, %29 : vector<16x128xf32>
    %31 = arith.mulf %25, %30 : vector<16x128xf32>
    %c0_13 = arith.constant 0 : index
    %c0_14 = arith.constant 0 : index
    %32 = vector.load %arg5[%c0_13, %c0_14] : memref<16x128xf32, #tpu.memory_space<vmem>>, vector<16x128xf32>
    tpu.vector_store %arg5[%c0_13, %c0_14], %31 {strides = array<i32>} : memref<16x128xf32, #tpu.memory_space<vmem>>, vector<16x128xf32>,
    return
  }
  func.func @transform_0(%arg0: i32) -> (i32, i32) {
    %c0_i32 = arith.constant 0 : i32
    %c0_i32_0 = arith.constant 0 : i32
    return %arg0, %c0_i32 : i32, i32
  }
  func.func @transform_1(%arg0: i32) -> (i32, i32) {
    %c0_i32 = arith.constant 0 : i32
    %c0_i32_0 = arith.constant 0 : i32
    %c0_i32_1 = arith.constant 0 : i32
    return %c0_i32, %c0_i32_0 : i32, i32
  }
  func.func @transform_2(%arg0: i32) -> (i32, i32) {
    %c0_i32 = arith.constant 0 : i32
    %c0_i32_0 = arith.constant 0 : i32
    %c0_i32_1 = arith.constant 0 : i32
    return %c0_i32, %c0_i32_0 : i32, i32
  }
  func.func @transform_3(%arg0: i32) -> (i32, i32) {
    %c0_i32 = arith.constant 0 : i32
    %c0_i32_0 = arith.constant 0 : i32
    %c0_i32_1 = arith.constant 0 : i32
    return %c0_i32, %c0_i32_0 : i32, i32
  }
  func.func @transform_4(%arg0: i32) -> (i32, i32) {
    %c0_i32 = arith.constant 0 : i32
    %c0_i32_0 = arith.constant 0 : i32
    return %arg0, %c0_i32 : i32, i32
  }
}

</mosaic_0001>

<bundles_post_ra>
// kernel: tpu_custom_call.1
= control target key start
LH: loop header
LB: loop body
LE: loop exit
PB: predicated region body
PF: predicated region fallthrough
CT: control target
= control target key end

     0   :  { %9 = vsyncpa [#allocation3], 0  ;;  %s450_s0 = inlined_call_operand.hbm [shape: f32[16,128], index: 0, kind: input, shape index: {}]   ;;  %s451_s1 = inlined_call_operand.hbm [shape: bf16[128,128], index: 1, kind: input, shape index: {}]   ;;  %s452_s2 = inlined_call_operand.vmem [shape: f32[1,128], index: 2, kind: input, shape index: {}]   ;;  %s453_s3 = inlined_call_operand.vmem [shape: f32[1,128], index: 3, kind: input, shape index: {}]   ;;  %s454_s4 = inlined_call_operand.hbm [shape: f32[16,128], index: 4, kind: output, shape index: {}]  }
   0x1   :  { %10 = vsyncpa [#allocation6], 0 }
   0x2   :  { %11 = vsyncpa [#allocation4], 0  ;;  %s16_s17 = sshll.u32 %s450_s0, 4  ;;  %s396_s18 = smov [#allocation2]   ;;  %s17_s17 = int_to_ptr.hbm [resolvable:$true] %s16_s17 }
   0x3   :  { %s18_s19 = sshll.u32 %s396_s18, 4  ;;  %s29_s22 = sshll.u32 %s451_s1, 4  ;;  %s19_s19 = int_to_ptr.vmem [resolvable:$true] %s18_s19  ;;  %s30_s22 = int_to_ptr.hbm [resolvable:$true] %s29_s22 }
   0x4   :  { %s397_s23 = smov 128   ;;  %s398_s24 = smov 8  }
   0x5   :  { %24 = dma.hbm_to_vmem [thread:$0]  %s17_s17, 256, %s19_s19, [#allocation3], %s397_s23, %s397_s23, %s398_s24  }
   0x6   :  { %s399_s25 = smov [#allocation5]   ;;  %s400_s27 = smov 64  }
   0x7   :  { %s31_s26 = sshll.u32 %s399_s25, 4  ;;  %s401_s0 = smov 4   ;;  %s32_s26 = int_to_ptr.vmem [resolvable:$true] %s31_s26 }
   0x8   :  { %37 = dma.hbm_to_vmem [thread:$0]  %s30_s22, 1024, %s32_s26, [#allocation6], %s400_s27, %s400_s27, %s401_s0  }
   0x9   :  { %390 = dma.done.wait [#allocation3], 256  }
   0xa   :  { %391 = vsyncadd [#allocation3], 4294967040 }
   0xb   :  { %392 = dma.done.wait [#allocation6], 1024  }
   0xc   :  { %393 = vsyncadd [#allocation6], 4294966272  ;;  %v293_v0 = vld [vmem:[#allocation5 + $0x38] sm:$0xff]  ;;  %v292_v1 = vld [vmem:[#allocation5 + $0x30] sm:$0xff]  ;;  %v402_v13 = vmov 128.0   ;;  %s238_s7 = sshll.u32 %s454_s4, 4  ;;  %s239_s7 = int_to_ptr.hbm [resolvable:$true] %s238_s7 }
   0xd   :  { %117 = vmatpush.bf16.msra.mxu0 %v293_v0  ;;  %v291_v2 = vld [vmem:[#allocation5 + $0x28] sm:$0xff]  ;;  %v290_v3 = vld [vmem:[#allocation5 + $0x20] sm:$0xff]  ;;  %v289_v4 = vld [vmem:[#allocation5 + $0x18] sm:$0xff]  ;;  %304 = vrcp.f32 %v402_v13 }
   0xe   :  { %v288_v5 = vld [vmem:[#allocation5 + $0x10] sm:$0xff]  ;;  %v287_v6 = vld [vmem:[#allocation5 + $0x8] sm:$0xff]  ;;  %v286_v7 = vld [vmem:[#allocation5] sm:$0xff] }
   0xf   :  { %v50_v8 = vld [vmem:[#allocation2] sm:$0xff]  ;;  %v51_v9 = vld [vmem:[#allocation2 + $0x8] sm:$0xff] }
  0x10   :  { %v52_v10 = vpack.c.bf16 %v51_v9, %v50_v8  ;;  %v302_v42 = vld [vmem:[%s452_s2] ss:$0 sm:$0xff]  ;;  %s403_s2 = smov [#allocation7]  }
  0x11   :  { %118 = vmatpush.bf16.msra.mxu0 %v292_v1  ;;  %v303_v46 = vld [vmem:[%s453_s3] ss:$0 sm:$0xff]  ;;  %s236_s3 = sshll.u32 %s403_s2, 4  ;;  %s237_s3 = int_to_ptr.vmem [resolvable:$true] %s236_s3 }
  0x13   :  { %v305_v14 = vpop.eup %304 }
  0x14   :  { %v138_v15 = vmul.f32 128.0, %v305_v14  ;;  %vm142_vm0 = vweird.f32 %v305_v14 }
  0x15   :  { %119 = vmatpush.bf16.msra.mxu0 %v291_v2 }
  0x16   :  { %v139_v16 = vsub.f32 1.0, %v138_v15 }
  0x18   :  { %v140_v17 = vmul.f32 %v305_v14, %v139_v16 }
  0x19   :  { %120 = vmatpush.bf16.msra.mxu0 %v290_v3 }
  0x1a   :  { %v141_v18 = vadd.f32 %v305_v14, %v140_v17 }
  0x1c   :  { %v143_v19 = vsel %vm142_vm0, %v305_v14, %v141_v18 }
  0x1d   :  { %121 = vmatpush.bf16.msra.mxu0 %v289_v4 }
  0x21   :  { %122 = vmatpush.bf16.msra.mxu0 %v288_v5 }
  0x25   :  { %123 = vmatpush.bf16.msra.mxu0 %v287_v6 }
  0x29   :  { %124 = vmatpush.bf16.msra.mxu0 %v286_v7 }
  0x2c   :  { %125 = vmatmul.bf16.vlgmr.msra.gmra.mxu0 %v52_v10 }
  0xa9   :  { %v126_v11 = vpop.f32.mrf.mxu0 }
  0xaa   :  { %133 = vadd.xlane.f32.xlu0 %v126_v11 }
  0xb1   :  { %v128_v12 = vpop.f32.mrf.mxu0 }
  0xb2   :  { %135 = vadd.xlane.f32.xlu0 %v128_v12 }
 0x11d   :  { %v134_v20 = vpop.xlane.xlu0 %133 }
 0x11e   :  { %v144_v21 = vmul.f32 %v143_v19, %v134_v20 }
 0x120   :  { %v146_v22 = vsub.f32 %v126_v11, %v144_v21 }
 0x122   :  { %v148_v23 = vmul.f32 %v146_v22, %v146_v22 }
 0x124   :  { %150 = vadd.xlane.f32.xlu1 %v148_v23 }
 0x125   :  { %v136_v24 = vpop.xlane.xlu0 %135 }
 0x126   :  { %v145_v25 = vmul.f32 %v143_v19, %v136_v24 }
 0x128   :  { %v147_v26 = vsub.f32 %v128_v12, %v145_v25 }
 0x12a   :  { %v149_v27 = vmul.f32 %v147_v26, %v147_v26 }
 0x12c   :  { %152 = vadd.xlane.f32.xlu1 %v149_v27 }
 0x197   :  { %v151_v28 = vpop.xlane.xlu1 %150 }
 0x198   :  { %v154_v29 = vmul.f32 %v151_v28, %v143_v19 }
 0x19a   :  { %v156_v30 = vadd.f32 1e-05, %v154_v29 }
 0x19c   :  { %306 = vrsqrt.f32 %v156_v30  ;;  %vm164_vm2 = vweird.f32 %v156_v30 }
 0x19f   :  { %v153_v31 = vpop.xlane.xlu1 %152 }
 0x1a0   :  { %v155_v32 = vmul.f32 %v153_v31, %v143_v19 }
 0x1a2   :  { %v307_v33 = vpop.eup %306  ;;  %v157_v34 = vadd.f32 1e-05, %v155_v32 }
 0x1a3   :  { %v159_v35 = vmul.f32 %v307_v33, %v156_v30  ;;  %vm165_vm1 = vweird.f32 %v307_v33 }
 0x1a4   :  { %308 = vrsqrt.f32 %v157_v34  ;;  %vm166_vm3 = vmor %vm164_vm2, %vm165_vm1  ;;  %vm174_vm5 = vweird.f32 %v157_v34 }
 0x1a5   :  { %v160_v36 = vmul.f32 %v307_v33, %v159_v35 }
 0x1a7   :  { %v161_v37 = vmul.f32 0.5, %v160_v36 }
 0x1a9   :  { %v162_v38 = vsub.f32 1.5, %v161_v37 }
 0x1aa   :  { %v309_v39 = vpop.eup %308 }
 0x1ab   :  { %v163_v40 = vmul.f32 %v307_v33, %v162_v38  ;;  %v169_v41 = vmul.f32 %v309_v39, %v157_v34  ;;  %vm175_vm4 = vweird.f32 %v309_v39 }
 0x1ac   :  { %vm176_vm6 = vmor %vm174_vm5, %vm175_vm4 }
 0x1ad   :  { %v167_v43 = vsel %vm166_vm3, %v307_v33, %v163_v40  ;;  %v170_v44 = vmul.f32 %v309_v39, %v169_v41 }
 0x1ae   :  { %v178_v45 = vmul.f32 %v167_v43, %v146_v22 }
 0x1af   :  { %v171_v47 = vmul.f32 0.5, %v170_v44 }
 0x1b0   :  { %v183_v48 = vmul.f32 %v302_v42, %v178_v45 }
 0x1b1   :  { %v172_v49 = vsub.f32 1.5, %v171_v47 }
 0x1b2   :  { %v188_v50 = vadd.f32 %v303_v46, %v183_v48 }
 0x1b3   :  { %v173_v51 = vmul.f32 %v309_v39, %v172_v49 }
 0x1b4   :  { %v284_v52 = vmul.f32 -1.442695, %v188_v50 }
 0x1b5   :  { %v177_v53 = vsel %vm176_vm6, %v309_v39, %v173_v51 }
 0x1b6   :  { %v179_v54 = vmul.f32 %v177_v53, %v147_v26  ;;  %310 = vpow2.f32 %v284_v52 }
 0x1b8   :  { %v184_v55 = vmul.f32 %v302_v42, %v179_v54 }
 0x1ba   :  { %v189_v56 = vadd.f32 %v303_v46, %v184_v55 }
 0x1bc   :  { %v311_v57 = vpop.eup %310  ;;  %v285_v58 = vmul.f32 -1.442695, %v189_v56 }
 0x1bd   :  { %v196_v59 = vadd.f32 1.0, %v311_v57 }
 0x1be   :  { %312 = vpow2.f32 %v285_v58 }
 0x1bf   :  { %314 = vrcp.f32 %v196_v59  ;;  %v209_v1 = vand.u32 2147483648, %v196_v59  ;;  %v207_v3 = vand.u32 2147483647, %v196_v59  ;;  %vm203_vm8 = vweird.f32 %v196_v59 }
 0x1c1   :  { %v210_v6 = vor.u32 1.1754944e-38, %v209_v1  ;;  %vm208_vm10 = vcmp.eq.f32.partialorder %v207_v3, 8.507059e+37 }
 0x1c4   :  { %v313_v60 = vpop.eup %312 }
 0x1c5   :  { %v315_v61 = vpop.eup %314  ;;  %v197_v62 = vadd.f32 1.0, %v313_v60 }
 0x1c6   :  { %v199_v63 = vmul.f32 %v315_v61, %v196_v59  ;;  %vm204_vm7 = vweird.f32 %v315_v61 }
 0x1c7   :  { %316 = vrcp.f32 %v197_v62  ;;  %vm205_vm9 = vmor %vm203_vm8, %vm204_vm7  ;;  %v224_v12 = vand.u32 2147483648, %v197_v62  ;;  %v222_v14 = vand.u32 2147483647, %v197_v62  ;;  %vm218_vm12 = vweird.f32 %v197_v62 }
 0x1c8   :  { %v200_v0 = vsub.f32 1.0, %v199_v63 }
 0x1c9   :  { %v225_v16 = vor.u32 1.1754944e-38, %v224_v12  ;;  %vm223_vm14 = vcmp.eq.f32.partialorder %v222_v14, 8.507059e+37 }
 0x1ca   :  { %v201_v2 = vmul.f32 %v315_v61, %v200_v0 }
 0x1cc   :  { %v202_v4 = vadd.f32 %v315_v61, %v201_v2 }
 0x1cd   :  { %v317_v5 = vpop.eup %316 }
 0x1ce   :  { %v206_v7 = vsel %vm205_vm9, %v315_v61, %v202_v4  ;;  %v214_v8 = vmul.f32 %v317_v5, %v197_v62  ;;  %vm219_vm11 = vweird.f32 %v317_v5 }
 0x1cf   :  { %v211_v9 = vsel %vm208_vm10, %v210_v6, %v206_v7  ;;  %vm220_vm13 = vmor %vm218_vm12, %vm219_vm11 }
 0x1d0   :  { %v215_v10 = vsub.f32 1.0, %v214_v8  ;;  %v228_v11 = vmul.f32 %v211_v9, %v188_v50 }
 0x1d2   :  { %v216_v13 = vmul.f32 %v317_v5, %v215_v10  ;;  %230 = vst [vmem:[#allocation7] sm:$0xff] %v228_v11 }
 0x1d4   :  { %v217_v15 = vadd.f32 %v317_v5, %v216_v13 }
 0x1d6   :  { %v221_v17 = vsel %vm220_vm13, %v317_v5, %v217_v15 }
 0x1d7   :  { %v226_v18 = vsel %vm223_vm14, %v225_v16, %v221_v17 }
 0x1d8   :  { %v229_v19 = vmul.f32 %v226_v18, %v189_v56 }
 0x1da   :  { %231 = vst [vmem:[#allocation7 + $0x8] sm:$0xff] %v229_v19 }
 0x1db   :  { %244 = dma.vmem_to_hbm [thread:$0]  %s237_s3, 256, %s239_s7, [#allocation4], %s397_s23, %s397_s23, %s398_s24  }
 0x1dc   :  { %394 = dma.done.wait [#allocation4], 256  }
 0x1dd   :  { %395 = vsyncadd [#allocation4], 4294967040 }
 0x1de   :  { %249 = vsyncpa [#allocation3], 1 }
 0x1df   :  { %250 = vsyncpa [#allocation6], 1 }
 0x1e0   :  { %251 = vsyncpa [#allocation4], 1 }

</bundles_post_ra>
